<compile_context>
chip_gen: v6e
topology: v6e:2x2x1
jax: 0.10.0
libtpu: 0.0.40
codegen_flags: <defaults>
</compile_context>

<pallas_src>
import jax
import jax.numpy as jnp
from jax.experimental import pallas as pl
from jax.experimental.pallas import tpu as pltpu


def _g2lg_copy_kernel(lg_x_ref, lg_ei_ref, lg_ea_ref,
                      x_out_ref, ei_out_ref, ea_out_ref,
                      sems):
    """Fused HBM->HBM copy of the three line-graph tensors.

    All refs live in memory_space=pl.ANY (left in HBM); the TensorCore only
    builds three DMA descriptors, starts them so they run concurrently, and
    waits for completion. No vector load/store work at all.
    """
    copies = (
        pltpu.make_async_copy(lg_x_ref, x_out_ref, sems.at[0]),
        pltpu.make_async_copy(lg_ei_ref, ei_out_ref, sems.at[1]),
        pltpu.make_async_copy(lg_ea_ref, ea_out_ref, sems.at[2]),
    )
    # Issue all three DMAs first so they overlap, then wait on all of them.
    for c in copies:
        c.start()
    for c in copies:
        c.wait()


def _device_copy_lg(lg_x, lg_edge_index, lg_edge_attr):
    """Materialize fresh device buffers for the line-graph tensors with a
    single fused Pallas launch (pure DMA, no compute)."""
    out_shape = (
        jax.ShapeDtypeStruct(lg_x.shape, lg_x.dtype),
        jax.ShapeDtypeStruct(lg_edge_index.shape, lg_edge_index.dtype),
        jax.ShapeDtypeStruct(lg_edge_attr.shape, lg_edge_attr.dtype),
    )
    return pl.pallas_call(
        _g2lg_copy_kernel,
        out_shape=out_shape,
        in_specs=[
            pl.BlockSpec(memory_space=pl.ANY),
            pl.BlockSpec(memory_space=pl.ANY),
            pl.BlockSpec(memory_space=pl.ANY),
        ],
        out_specs=(
            pl.BlockSpec(memory_space=pl.ANY),
            pl.BlockSpec(memory_space=pl.ANY),
            pl.BlockSpec(memory_space=pl.ANY),
        ),
        scratch_shapes=[pltpu.SemaphoreType.DMA((3,))],
    )(lg_x, lg_edge_index, lg_edge_attr)


def g2lg_forward(batch, *, copy_on_device=False):
    """Mirror of g2lg.forward.

    Default (copy_on_device=False): pure re-binding, zero HBM traffic —
    exactly matches the PyTorch semantics (attribute re-binding, no compute).

    copy_on_device=True: additionally materializes fresh, distinct device
    buffers for x / edge_index / edge_attr via one fused HBM->HBM DMA kernel
    (only for callers that contractually need new allocations).
    """
    out = dict(batch)
    if copy_on_device:
        x_new, ei_new, ea_new = _device_copy_lg(
            batch["lg_x"], batch["lg_edge_index"], batch["lg_edge_attr"])
        out["x"] = x_new
        out["edge_index"] = ei_new
        out["edge_attr"] = ea_new
    else:
        out["x"] = batch["lg_x"]
        out["edge_index"] = batch["lg_edge_index"]
        out["edge_attr"] = batch["lg_edge_attr"]
    return out


if __name__ == "__main__":
    key = jax.random.PRNGKey(0)
    k1, k2, k3, k4, k5 = jax.random.split(key, 5)

    # Original graph: 8 nodes, 12 edges, hidden=32.
    n_nodes, n_edges, hidden = 8, 12, 32
    # Line graph: nodes = original edges (12), edges = 24, hidden=32.
    n_lg_nodes, n_lg_edges = n_edges, 24

    batch = {
        # original-graph tensors (untouched by g2lg, carried through)
        "x": jax.random.normal(k1, (n_nodes, hidden), jnp.float32),
        "edge_index": jax.random.randint(k2, (2, n_edges), 0, n_nodes, jnp.int32),
        "edge_attr": jax.random.normal(k3, (n_edges, hidden), jnp.float32),
        # line-graph tensors (become the new x / edge_index / edge_attr)
        "lg_x": jax.random.normal(k4, (n_lg_nodes, hidden), jnp.float32),
        "lg_edge_index": jax.random.randint(
            k5, (2, n_lg_edges), 0, n_lg_nodes, jnp.int32),
        "lg_edge_attr": jax.random.normal(
            jax.random.fold_in(key, 7), (n_lg_edges, hidden), jnp.float32),
    }

    # --- Fast path: pure re-binding (the recommended, zero-cost version). ---
    out = g2lg_forward(batch)
    jax.block_until_ready((out["x"], out["edge_index"], out["edge_attr"]))
    assert out["x"].shape == batch["lg_x"].shape
    assert out["edge_index"].dtype == batch["lg_edge_index"].dtype
    assert bool(jnp.all(out["x"] == batch["lg_x"]))
    assert bool(jnp.all(out["edge_index"] == batch["lg_edge_index"]))
    assert bool(jnp.all(out["edge_attr"] == batch["lg_edge_attr"]))

    # --- Kernel path: fused HBM->HBM DMA copy of all three tensors. ---
    out_copy = g2lg_forward(batch, copy_on_device=True)
    jax.block_until_ready(
        (out_copy["x"], out_copy["edge_index"], out_copy["edge_attr"]))
    assert out_copy["x"].shape == batch["lg_x"].shape
    assert out_copy["edge_index"].shape == batch["lg_edge_index"].shape
    assert out_copy["edge_attr"].shape == batch["lg_edge_attr"].shape
    assert bool(jnp.all(out_copy["x"] == batch["lg_x"]))
    assert bool(jnp.all(out_copy["edge_index"] == batch["lg_edge_index"]))
    assert bool(jnp.all(out_copy["edge_attr"] == batch["lg_edge_attr"]))

    print("KERNEL_OK")
</pallas_src>

<mosaic_0001>
module attributes {stable_mosaic.version = 11 : i64} {
  func.func @_g2lg_copy_kernel(%arg0: memref<12x32xf32, #tpu.memory_space<any>>, %arg1: memref<2x24xi32, #tpu.memory_space<any>>, %arg2: memref<24x32xf32, #tpu.memory_space<any>>, %arg3: memref<12x32xf32, #tpu.memory_space<any>>, %arg4: memref<2x24xi32, #tpu.memory_space<any>>, %arg5: memref<24x32xf32, #tpu.memory_space<any>>, %arg6: memref<3x!tpu.dma_semaphore, #tpu.memory_space<semaphore_mem>>) attributes {dimension_semantics = [], scalar_prefetch = 0 : i64, scratch_operands = 1 : i64, tpu.core_type = #tpu.core_type<tc>} {
    %c0_i32 = arith.constant 0 : i32
    %0 = tpu.memref_slice %arg6[%c0_i32] : memref<3x!tpu.dma_semaphore, #tpu.memory_space<semaphore_mem>> -> memref<1x!tpu.dma_semaphore, #tpu.memory_space<semaphore_mem>>
    %1 = tpu.memref_squeeze %0 : memref<1x!tpu.dma_semaphore, #tpu.memory_space<semaphore_mem>> -> memref<!tpu.dma_semaphore, #tpu.memory_space<semaphore_mem>>
    tpu.enqueue_dma source(%arg0 : memref<12x32xf32, #tpu.memory_space<any>>) target(%arg3 : memref<12x32xf32, #tpu.memory_space<any>>) target_semaphore(%1 : memref<!tpu.dma_semaphore, #tpu.memory_space<semaphore_mem>>)
    %c1_i32 = arith.constant 1 : i32
    %2 = tpu.memref_slice %arg6[%c1_i32] : memref<3x!tpu.dma_semaphore, #tpu.memory_space<semaphore_mem>> -> memref<1x!tpu.dma_semaphore, #tpu.memory_space<semaphore_mem>>
    %3 = tpu.memref_squeeze %2 : memref<1x!tpu.dma_semaphore, #tpu.memory_space<semaphore_mem>> -> memref<!tpu.dma_semaphore, #tpu.memory_space<semaphore_mem>>
    tpu.enqueue_dma source(%arg1 : memref<2x24xi32, #tpu.memory_space<any>>) target(%arg4 : memref<2x24xi32, #tpu.memory_space<any>>) target_semaphore(%3 : memref<!tpu.dma_semaphore, #tpu.memory_space<semaphore_mem>>)
    %c2_i32 = arith.constant 2 : i32
    %4 = tpu.memref_slice %arg6[%c2_i32] : memref<3x!tpu.dma_semaphore, #tpu.memory_space<semaphore_mem>> -> memref<1x!tpu.dma_semaphore, #tpu.memory_space<semaphore_mem>>
    %5 = tpu.memref_squeeze %4 : memref<1x!tpu.dma_semaphore, #tpu.memory_space<semaphore_mem>> -> memref<!tpu.dma_semaphore, #tpu.memory_space<semaphore_mem>>
    tpu.enqueue_dma source(%arg2 : memref<24x32xf32, #tpu.memory_space<any>>) target(%arg5 : memref<24x32xf32, #tpu.memory_space<any>>) target_semaphore(%5 : memref<!tpu.dma_semaphore, #tpu.memory_space<semaphore_mem>>)
    %c0_i32_0 = arith.constant 0 : i32
    %6 = tpu.memref_slice %arg6[%c0_i32_0] : memref<3x!tpu.dma_semaphore, #tpu.memory_space<semaphore_mem>> -> memref<1x!tpu.dma_semaphore, #tpu.memory_space<semaphore_mem>>
    %7 = tpu.memref_squeeze %6 : memref<1x!tpu.dma_semaphore, #tpu.memory_space<semaphore_mem>> -> memref<!tpu.dma_semaphore, #tpu.memory_space<semaphore_mem>>
    tpu.wait_dma2 semaphore(%7 : memref<!tpu.dma_semaphore, #tpu.memory_space<semaphore_mem>>) src(%arg0 : memref<12x32xf32, #tpu.memory_space<any>>) dst(%arg3 : memref<12x32xf32, #tpu.memory_space<any>>)
    %c1_i32_1 = arith.constant 1 : i32
    %8 = tpu.memref_slice %arg6[%c1_i32_1] : memref<3x!tpu.dma_semaphore, #tpu.memory_space<semaphore_mem>> -> memref<1x!tpu.dma_semaphore, #tpu.memory_space<semaphore_mem>>
    %9 = tpu.memref_squeeze %8 : memref<1x!tpu.dma_semaphore, #tpu.memory_space<semaphore_mem>> -> memref<!tpu.dma_semaphore, #tpu.memory_space<semaphore_mem>>
    tpu.wait_dma2 semaphore(%9 : memref<!tpu.dma_semaphore, #tpu.memory_space<semaphore_mem>>) src(%arg1 : memref<2x24xi32, #tpu.memory_space<any>>) dst(%arg4 : memref<2x24xi32, #tpu.memory_space<any>>)
    %c2_i32_2 = arith.constant 2 : i32
    %10 = tpu.memref_slice %arg6[%c2_i32_2] : memref<3x!tpu.dma_semaphore, #tpu.memory_space<semaphore_mem>> -> memref<1x!tpu.dma_semaphore, #tpu.memory_space<semaphore_mem>>
    %11 = tpu.memref_squeeze %10 : memref<1x!tpu.dma_semaphore, #tpu.memory_space<semaphore_mem>> -> memref<!tpu.dma_semaphore, #tpu.memory_space<semaphore_mem>>
    tpu.wait_dma2 semaphore(%11 : memref<!tpu.dma_semaphore, #tpu.memory_space<semaphore_mem>>) src(%arg2 : memref<24x32xf32, #tpu.memory_space<any>>) dst(%arg5 : memref<24x32xf32, #tpu.memory_space<any>>)
    return
  }
}

</mosaic_0001>

<bundles_post_ra>
// kernel: tpu_custom_call.1
= control target key start
LH: loop header
LB: loop body
LE: loop exit
PB: predicated region body
PF: predicated region fallthrough
CT: control target
= control target key end

     0   :  { %s77_s18 = smov [#allocation2]   ;;  %s78_s19 = smov 131072   ;;  %s130_s0 = inlined_call_operand.hbm [shape: f32[12,32], index: 0, kind: input, shape index: {}]   ;;  %s131_s3 = inlined_call_operand.hbm [shape: f32[12,32], index: 3, kind: output, shape index: {0}]   ;;  %s132_s1 = inlined_call_operand.hbm [shape: s32[2,24], index: 1, kind: input, shape index: {}]   ;;  %s133_s4 = inlined_call_operand.hbm [shape: s32[2,24], index: 4, kind: output, shape index: {1}]   ;;  %s134_s2 = inlined_call_operand.hbm [shape: f32[24,32], index: 2, kind: input, shape index: {}]   ;;  %s135_s5 = inlined_call_operand.hbm [shape: f32[24,32], index: 5, kind: output, shape index: {2}]  }
   0x1   :  { %s79_s20 = smov 0   ;;  %s80_s25 = smov [#allocation2 + $0x1]  }
   0x2   :  { %17 = dma.general %s130_s0, 192, %s131_s3, %s77_s18, %s78_s19, [#allocation4], %s79_s20, 0  }
   0x3   :  { %25 = dma.general %s132_s1, 32, %s133_s4, %s80_s25, %s78_s19, [#allocation6], %s79_s20, 0  }
   0x4   :  { %s81_s30 = smov [#allocation2 + $0x2]  }
   0x5   :  { %33 = dma.general %s134_s2, 384, %s135_s5, %s81_s30, %s78_s19, [#allocation8], %s79_s20, 0  }
   0x6   :  { %71 = dma.done.wait [#allocation2], 192 }
   0x7   :  { %72 = vsyncadd [#allocation2], 4294967104 }
   0x8   :  { %73 = dma.done.wait [#allocation2 + $0x1], 32 }
   0x9   :  { %74 = vsyncadd [#allocation2 + $0x1], 4294967264 }
   0xa   :  { %75 = dma.done.wait [#allocation2 + $0x2], 384 }
   0xb   :  { %76 = vsyncadd [#allocation2 + $0x2], 4294966912 }
   0xc   :  { %43 = vsyncmov [#allocation2] }
   0xf   :  { %s44_s0 = vpop.sfrf %43 }
  0x10   :  { %p63_p0 = scmp.ne.s32.totalorder %s44_s0, 0 }
  0x12   :  { %48 = shalt.err (%p63_p0)  }
  0x13   :  { %50 = vsyncmov [#allocation2 + $0x1] }
  0x16   :  { %s51_s1 = vpop.sfrf %50 }
  0x17   :  { %p64_p1 = scmp.ne.s32.totalorder %s51_s1, 0 }
  0x19   :  { %55 = shalt.err (%p64_p1)  }
  0x1a   :  { %57 = vsyncmov [#allocation2 + $0x2] }
  0x1d   :  { %s58_s3 = vpop.sfrf %57 }
  0x1e   :  { %p65_p2 = scmp.ne.s32.totalorder %s58_s3, 0 }
  0x20   :  { %62 = shalt.err (%p65_p2)  }

</bundles_post_ra>
